<compile_context>
chip_gen: v5e
topology: v5e:2x2
jax: 0.10.0
libtpu: 0.0.40
codegen_flags: <defaults>
</compile_context>

<pallas_src>
import functools

import jax
import jax.numpy as jnp
from jax import lax
from jax.experimental import pallas as pl
from jax.experimental.pallas import tpu as pltpu


# ----------------------------- Pallas kernel ------------------------------- #

def _fused_ln_ffn_kernel(x_ref, scale_ref, shift_ref, w1_ref, b1_ref,
                         w2_ref, b2_ref, o_ref, *, eps, matmul_dtype, f_chunk):
    # ---- LayerNorm (f32 elementwise; rsqrt -> EUP slot) ----
    x = x_ref[...].astype(jnp.float32)                        # [tile, D]
    mean = jnp.mean(x, axis=-1, keepdims=True)
    cen = x - mean
    var = jnp.mean(cen * cen, axis=-1, keepdims=True)         # unbiased=False
    norm = cen * lax.rsqrt(var + eps)
    y = norm * scale_ref[...].astype(jnp.float32) + shift_ref[...].astype(jnp.float32)
    y_mm = y.astype(matmul_dtype)                              # MXU operand dtype

    def gelu(h):
        # Module's (non-standard) GELU: 0.5 * x * (1 + tanh(x * (1 + 0.044715 * x^2)))
        return 0.5 * h * (1.0 + jnp.tanh(h * (1.0 + 0.044715 * h * h)))

    # TODO(synk): nn.Dropout is identity at inference; training-mode dropout not modeled.
    f_total = w1_ref.shape[1]
    if f_total <= f_chunk:
        # Single-shot path (small/medium F): both matmuls over the full hidden dim.
        h = jnp.dot(y_mm, w1_ref[...], preferred_element_type=jnp.float32)
        h = h + b1_ref[...].astype(jnp.float32)
        g = gelu(h)
        out = jnp.dot(g.astype(matmul_dtype), w2_ref[...],
                      preferred_element_type=jnp.float32)
        out = out + b2_ref[...].astype(jnp.float32)
    else:
        # F-chunked path: bounds VMEM for large F (h/g only [tile, f_chunk] live).
        tile_rows = x_ref.shape[0]
        d_out = w2_ref.shape[1]

        def body(c, acc):
            off = pl.multiple_of(c * f_chunk, f_chunk)
            h = jnp.dot(y_mm, w1_ref[:, pl.ds(off, f_chunk)],
                        preferred_element_type=jnp.float32)
            h = h + b1_ref[:, pl.ds(off, f_chunk)].astype(jnp.float32)
            g = gelu(h)
            return acc + jnp.dot(g.astype(matmul_dtype),
                                 w2_ref[pl.ds(off, f_chunk), :],
                                 preferred_element_type=jnp.float32)

        acc0 = jnp.zeros((tile_rows, d_out), jnp.float32)
        out = lax.fori_loop(0, f_total // f_chunk, body, acc0)
        out = out + b2_ref[...].astype(jnp.float32)

    o_ref[...] = out.astype(o_ref.dtype)


# ------------------------------ Wrappers ----------------------------------- #

def _round_up(a, b):
    return (a + b - 1) // b * b


def transformer_block_forward(x):
    """Exact semantics of the surviving TransformerBlock.forward: identity.

    No copy kernel is emitted — zero HBM traffic."""
    return x


def layernorm_ffn_forward(x, scale, shift, w1, b1, w2, b2, *,
                          eps=1e-5, row_tile=512, f_chunk=512,
                          matmul_dtype=jnp.bfloat16,
                          activation_dtype=jnp.bfloat16):
    """Fused LayerNorm + FeedForward (the shadowed forward's compute path).

    One pallas_call: the activation is read once from HBM and the result
    written once. Weights stay VMEM-resident (constant index_maps). Output is
    stored at width D directly (no column padding, no wrapper slice pass); row
    padding only when rows don't divide the tile; F padded (weights only) when
    F % 128 != 0. matmul operands default to bf16 with f32 accumulation.
    """
    B, T, D = x.shape
    F = w1.shape[1]
    rows = B * T
    out_dtype = x.dtype

    # Hidden-dim layout: lane-dense only when padding is actually needed.
    f_chunk = max(128, _round_up(f_chunk, 128))
    F_pad = F if F % 128 == 0 else _round_up(F, 128)
    if F_pad > f_chunk:
        F_pad = _round_up(F_pad, f_chunk)     # chunked path needs F_pad % f_chunk == 0

    # Row tiling: big tiles, but guarantee >= 2 tiles so v7x megacore shards rows.
    rows_p = _round_up(rows, 8)
    tile = min(row_tile, rows_p)
    if rows_p // tile < 2 and rows_p > 8:
        tile = _round_up(rows_p, 16) // 2     # two half-row tiles (multiple of 8)
    rows_pad = _round_up(rows_p, tile)
    grid = rows_pad // tile

    # Activation streaming: bf16 by default (LN stats stay f32 in-kernel).
    x2 = x.reshape(rows, D)
    if activation_dtype is not None and x2.dtype != activation_dtype:
        x2 = x2.astype(activation_dtype)
    if rows_pad != rows:
        x2 = jnp.pad(x2, ((0, rows_pad - rows), (0, 0)))   # zero rows are LN-safe

    # Weights/bias: cast matmul operands once; pad F only when needed (weight-only).
    w1p = w1.astype(matmul_dtype)
    w2p = w2.astype(matmul_dtype)
    b1p = b1.reshape(1, F).astype(jnp.float32)
    if F_pad != F:
        w1p = jnp.pad(w1p, ((0, 0), (0, F_pad - F)))
        w2p = jnp.pad(w2p, ((0, F_pad - F), (0, 0)))
        b1p = jnp.pad(b1p, ((0, 0), (0, F_pad - F)))
    b2p = b2.reshape(1, D).astype(jnp.float32)
    scale2 = scale.reshape(1, D).astype(jnp.float32)
    shift2 = shift.reshape(1, D).astype(jnp.float32)

    # Explicit VMEM budget: above v5e's 16 MiB default scoped limit, clamped to
    # v7x's 64 MiB physical VMEM. Weights counted twice (default double-buffer).
    mm_b = jnp.dtype(matmul_dtype).itemsize
    act_b = jnp.dtype(x2.dtype).itemsize
    out_b = jnp.dtype(out_dtype).itemsize
    weights = (2 * D * F_pad) * mm_b + (F_pad + 3 * D) * 4
    tiles = tile * D * (act_b + out_b) * 2                     # double-buffered I/O tiles
    inter = tile * (min(F_pad, f_chunk) + 3 * D) * 4           # f32 h/g/norm intermediates
    est = 2 * weights + tiles + 2 * inter
    vmem_limit = int(min(max(2 * est, 32 << 20), 64 << 20))

    out = pl.pallas_call(
        functools.partial(_fused_ln_ffn_kernel, eps=eps,
                          matmul_dtype=matmul_dtype, f_chunk=f_chunk),
        out_shape=jax.ShapeDtypeStruct((rows_pad, D), out_dtype),
        grid=(grid,),
        in_specs=[
            pl.BlockSpec((tile, D), lambda i: (i, 0)),          # activations
            pl.BlockSpec((1, D), lambda i: (0, 0)),             # ln scale (constant idx)
            pl.BlockSpec((1, D), lambda i: (0, 0)),             # ln shift
            pl.BlockSpec((D, F_pad), lambda i: (0, 0)),         # w1 (no re-DMA across steps)
            pl.BlockSpec((1, F_pad), lambda i: (0, 0)),         # b1
            pl.BlockSpec((F_pad, D), lambda i: (0, 0)),         # w2
            pl.BlockSpec((1, D), lambda i: (0, 0)),             # b2
        ],
        out_specs=pl.BlockSpec((tile, D), lambda i: (i, 0)),    # direct-width store, no slice pass
        compiler_params=pltpu.CompilerParams(
            dimension_semantics=("parallel",),                  # megacore-shardable on v7x
            vmem_limit_bytes=vmem_limit),
    )(x2, scale2, shift2, w1p, b1p, w2p, b2p)

    if rows_pad != rows:
        out = out[:rows]
    return out.reshape(B, T, D)


# ------------------------------ Reference ----------------------------------- #

def _ref_ln_ffn(x, scale, shift, w1, b1, w2, b2, eps=1e-5):
    x = x.astype(jnp.float32)
    mean = jnp.mean(x, axis=-1, keepdims=True)
    var = jnp.mean((x - mean) ** 2, axis=-1, keepdims=True)
    y = (x - mean) / jnp.sqrt(var + eps) * scale + shift
    h = y @ w1 + b1
    g = 0.5 * h * (1.0 + jnp.tanh(h * (1.0 + 0.044715 * h * h)))
    return g @ w2 + b2


# --------------------------------- Main -------------------------------------- #

if __name__ == "__main__":
    # config: embed_dim=32, embed_dim_ff_dim=64, ctx_len=8, batch=2
    B, T, D, F = 2, 8, 32, 64

    key = jax.random.PRNGKey(0)
    kx, kw1, kb1, kw2, kb2 = jax.random.split(key, 5)

    x = jax.random.normal(kx, (B, T, D), dtype=jnp.float32)

    ln_scale = jnp.ones((D,), dtype=jnp.float32)
    ln_shift = jnp.zeros((D,), dtype=jnp.float32)
    w1 = jax.random.normal(kw1, (D, F), dtype=jnp.float32) * 0.02
    b1 = jax.random.normal(kb1, (F,), dtype=jnp.float32) * 0.02
    w2 = jax.random.normal(kw2, (F, D), dtype=jnp.float32) * 0.02
    b2 = jax.random.normal(kb2, (D,), dtype=jnp.float32) * 0.02

    # 1) Effective TransformerBlock.forward semantics: identity, zero data movement.
    y = transformer_block_forward(x)
    jax.block_until_ready(y)
    assert jnp.array_equal(y, x), "TransformerBlock forward (identity) mismatch"

    ref = _ref_ln_ffn(x, ln_scale, ln_shift, w1, b1, w2, b2)

    # 2) Exact path: f32 matmul operands + f32 activations (tight tolerance).
    out_exact = layernorm_ffn_forward(x, ln_scale, ln_shift, w1, b1, w2, b2,
                                      matmul_dtype=jnp.float32,
                                      activation_dtype=jnp.float32)
    jax.block_until_ready(out_exact)
    assert jnp.allclose(out_exact, ref, atol=1e-5, rtol=1e-5), \
        "Fused LN+FFN kernel (f32) mismatch"

    # 3) Default fast path: bf16 matmul operands + bf16 activation streaming,
    #    f32 accumulation / LN / GELU (loose tolerance appropriate for bf16).
    out_fast = layernorm_ffn_forward(x, ln_scale, ln_shift, w1, b1, w2, b2)
    jax.block_until_ready(out_fast)
    assert jnp.allclose(out_fast.astype(jnp.float32), ref, atol=5e-3, rtol=5e-2), \
        "Fused LN+FFN kernel (bf16 default) mismatch"

    print("KERNEL_OK")
</pallas_src>

<mosaic_0001>
module attributes {stable_mosaic.version = 11 : i64} {
  func.func @_fused_ln_ffn_kernel(%arg0: i32, %arg1: memref<8x32xf32, #tpu.memory_space<vmem>>, %arg2: memref<1x32xf32, #tpu.memory_space<vmem>>, %arg3: memref<1x32xf32, #tpu.memory_space<vmem>>, %arg4: memref<32x128xf32, #tpu.memory_space<vmem>>, %arg5: memref<1x128xf32, #tpu.memory_space<vmem>>, %arg6: memref<128x32xf32, #tpu.memory_space<vmem>>, %arg7: memref<1x32xf32, #tpu.memory_space<vmem>>, %arg8: memref<8x32xf32, #tpu.memory_space<vmem>>) attributes {dimension_semantics = [#tpu.dimension_semantics<parallel>], iteration_bounds = array<i64: 2>, scalar_prefetch = 0 : i64, scratch_operands = 0 : i64, tpu.core_type = #tpu.core_type<tc>, window_params = [{transform_indices = @transform_0, window_bounds = array<i64: 8, 32>}, {pipeline_mode = #tpu.pipeline_mode<synchronous>, transform_indices = @transform_1, window_bounds = array<i64: 1, 32>}, {pipeline_mode = #tpu.pipeline_mode<synchronous>, transform_indices = @transform_2, window_bounds = array<i64: 1, 32>}, {pipeline_mode = #tpu.pipeline_mode<synchronous>, transform_indices = @transform_3, window_bounds = array<i64: 32, 128>}, {pipeline_mode = #tpu.pipeline_mode<synchronous>, transform_indices = @transform_4, window_bounds = array<i64: 1, 128>}, {pipeline_mode = #tpu.pipeline_mode<synchronous>, transform_indices = @transform_5, window_bounds = array<i64: 128, 32>}, {pipeline_mode = #tpu.pipeline_mode<synchronous>, transform_indices = @transform_6, window_bounds = array<i64: 1, 32>}, {transform_indices = @transform_7, window_bounds = array<i64: 8, 32>}]} {
    %c0 = arith.constant 0 : index
    %c0_0 = arith.constant 0 : index
    %0 = vector.load %arg1[%c0, %c0_0] : memref<8x32xf32, #tpu.memory_space<vmem>>, vector<8x32xf32>
    %cst = arith.constant dense<0.000000e+00> : vector<8xf32>
    %1 = vector.multi_reduction <add>, %0, %cst [1] : vector<8x32xf32> to vector<8xf32>
    %2 = vector.shape_cast %1 : vector<8xf32> to vector<8x1xf32>
    %cst_1 = arith.constant 3.200000e+01 : f32
    %3 = vector.broadcast %cst_1 : f32 to vector<8x1xf32>
    %4 = arith.divf %2, %3 : vector<8x1xf32>
    %5 = vector.broadcast %4 : vector<8x1xf32> to vector<8x32xf32>
    %6 = arith.subf %0, %5 : vector<8x32xf32>
    %7 = arith.mulf %6, %6 : vector<8x32xf32>
    %cst_2 = arith.constant dense<0.000000e+00> : vector<8xf32>
    %8 = vector.multi_reduction <add>, %7, %cst_2 [1] : vector<8x32xf32> to vector<8xf32>
    %9 = vector.shape_cast %8 : vector<8xf32> to vector<8x1xf32>
    %cst_3 = arith.constant 3.200000e+01 : f32
    %10 = vector.broadcast %cst_3 : f32 to vector<8x1xf32>
    %11 = arith.divf %9, %10 : vector<8x1xf32>
    %cst_4 = arith.constant 9.99999974E-6 : f32
    %12 = vector.broadcast %cst_4 : f32 to vector<8x1xf32>
    %13 = arith.addf %11, %12 : vector<8x1xf32>
    %14 = math.rsqrt %13 : vector<8x1xf32>
    %15 = vector.broadcast %14 : vector<8x1xf32> to vector<8x32xf32>
    %16 = arith.mulf %6, %15 : vector<8x32xf32>
    %c0_5 = arith.constant 0 : index
    %c0_6 = arith.constant 0 : index
    %17 = vector.load %arg2[%c0_5, %c0_6] : memref<1x32xf32, #tpu.memory_space<vmem>>, vector<1x32xf32>
    %18 = vector.broadcast %17 : vector<1x32xf32> to vector<8x32xf32>
    %19 = arith.mulf %16, %18 : vector<8x32xf32>
    %c0_7 = arith.constant 0 : index
    %c0_8 = arith.constant 0 : index
    %20 = vector.load %arg3[%c0_7, %c0_8] : memref<1x32xf32, #tpu.memory_space<vmem>>, vector<1x32xf32>
    %21 = vector.broadcast %20 : vector<1x32xf32> to vector<8x32xf32>
    %22 = arith.addf %19, %21 : vector<8x32xf32>
    %c0_9 = arith.constant 0 : index
    %c0_10 = arith.constant 0 : index
    %23 = vector.load %arg4[%c0_9, %c0_10] : memref<32x128xf32, #tpu.memory_space<vmem>>, vector<32x128xf32>
    %cst_11 = arith.constant dense<0.000000e+00> : vector<8x128xf32>
    %24 = tpu.matmul %22, %23, %cst_11 {dimension_numbers = #tpu.dot_dimension_numbers<[1], [0], [0], [1], [0, 0, 1, 1], [], []>} : vector<8x32xf32>, vector<32x128xf32>, vector<8x128xf32> -> vector<8x128xf32>
    %c0_12 = arith.constant 0 : index
    %c0_13 = arith.constant 0 : index
    %25 = vector.load %arg5[%c0_12, %c0_13] : memref<1x128xf32, #tpu.memory_space<vmem>>, vector<1x128xf32>
    %26 = vector.broadcast %25 : vector<1x128xf32> to vector<8x128xf32>
    %27 = arith.addf %24, %26 : vector<8x128xf32>
    %cst_14 = arith.constant 5.000000e-01 : f32
    %28 = vector.broadcast %cst_14 : f32 to vector<8x128xf32>
    %29 = arith.mulf %28, %27 : vector<8x128xf32>
    %cst_15 = arith.constant 4.471500e-02 : f32
    %30 = vector.broadcast %cst_15 : f32 to vector<8x128xf32>
    %31 = arith.mulf %30, %27 : vector<8x128xf32>
    %32 = arith.mulf %31, %27 : vector<8x128xf32>
    %cst_16 = arith.constant 1.000000e+00 : f32
    %33 = vector.broadcast %cst_16 : f32 to vector<8x128xf32>
    %34 = arith.addf %33, %32 : vector<8x128xf32>
    %35 = arith.mulf %27, %34 : vector<8x128xf32>
    %36 = math.tanh %35 : vector<8x128xf32>
    %cst_17 = arith.constant 1.000000e+00 : f32
    %37 = vector.broadcast %cst_17 : f32 to vector<8x128xf32>
    %38 = arith.addf %37, %36 : vector<8x128xf32>
    %39 = arith.mulf %29, %38 : vector<8x128xf32>
    %c0_18 = arith.constant 0 : index
    %c0_19 = arith.constant 0 : index
    %40 = vector.load %arg6[%c0_18, %c0_19] : memref<128x32xf32, #tpu.memory_space<vmem>>, vector<128x32xf32>
    %cst_20 = arith.constant dense<0.000000e+00> : vector<8x32xf32>
    %41 = tpu.matmul %39, %40, %cst_20 {dimension_numbers = #tpu.dot_dimension_numbers<[1], [0], [0], [1], [0, 0, 1, 1], [], []>} : vector<8x128xf32>, vector<128x32xf32>, vector<8x32xf32> -> vector<8x32xf32>
    %c0_21 = arith.constant 0 : index
    %c0_22 = arith.constant 0 : index
    %42 = vector.load %arg7[%c0_21, %c0_22] : memref<1x32xf32, #tpu.memory_space<vmem>>, vector<1x32xf32>
    %43 = vector.broadcast %42 : vector<1x32xf32> to vector<8x32xf32>
    %44 = arith.addf %41, %43 : vector<8x32xf32>
    %c0_23 = arith.constant 0 : index
    %c0_24 = arith.constant 0 : index
    %45 = vector.load %arg8[%c0_23, %c0_24] : memref<8x32xf32, #tpu.memory_space<vmem>>, vector<8x32xf32>
    tpu.vector_store %arg8[%c0_23, %c0_24], %44 {strides = array<i32>} : memref<8x32xf32, #tpu.memory_space<vmem>>, vector<8x32xf32>,
    return
  }
  func.func @transform_0(%arg0: i32) -> (i32, i32) {
    %c0_i32 = arith.constant 0 : i32
    %c0_i32_0 = arith.constant 0 : i32
    return %arg0, %c0_i32 : i32, i32
  }
  func.func @transform_1(%arg0: i32) -> (i32, i32) {
    %c0_i32 = arith.constant 0 : i32
    %c0_i32_0 = arith.constant 0 : i32
    %c0_i32_1 = arith.constant 0 : i32
    return %c0_i32, %c0_i32_0 : i32, i32
  }
  func.func @transform_2(%arg0: i32) -> (i32, i32) {
    %c0_i32 = arith.constant 0 : i32
    %c0_i32_0 = arith.constant 0 : i32
    %c0_i32_1 = arith.constant 0 : i32
    return %c0_i32, %c0_i32_0 : i32, i32
  }
  func.func @transform_3(%arg0: i32) -> (i32, i32) {
    %c0_i32 = arith.constant 0 : i32
    %c0_i32_0 = arith.constant 0 : i32
    %c0_i32_1 = arith.constant 0 : i32
    return %c0_i32, %c0_i32_0 : i32, i32
  }
  func.func @transform_4(%arg0: i32) -> (i32, i32) {
    %c0_i32 = arith.constant 0 : i32
    %c0_i32_0 = arith.constant 0 : i32
    %c0_i32_1 = arith.constant 0 : i32
    return %c0_i32, %c0_i32_0 : i32, i32
  }
  func.func @transform_5(%arg0: i32) -> (i32, i32) {
    %c0_i32 = arith.constant 0 : i32
    %c0_i32_0 = arith.constant 0 : i32
    %c0_i32_1 = arith.constant 0 : i32
    return %c0_i32, %c0_i32_0 : i32, i32
  }
  func.func @transform_6(%arg0: i32) -> (i32, i32) {
    %c0_i32 = arith.constant 0 : i32
    %c0_i32_0 = arith.constant 0 : i32
    %c0_i32_1 = arith.constant 0 : i32
    return %c0_i32, %c0_i32_0 : i32, i32
  }
  func.func @transform_7(%arg0: i32) -> (i32, i32) {
    %c0_i32 = arith.constant 0 : i32
    %c0_i32_0 = arith.constant 0 : i32
    return %arg0, %c0_i32 : i32, i32
  }
}

</mosaic_0001>

<bundles_post_ra>
// kernel: tpu_custom_call.1
= control target key start
LH: loop header
LB: loop body
LE: loop exit
PB: predicated region body
PF: predicated region fallthrough
CT: control target
= control target key end

     0   :  { %12 = vsyncpa [#allocation3], 0  ;;  %s797_s0 = inlined_call_operand.vmem [shape: f32[16,32], index: 0, kind: input, shape index: {}]   ;;  %s798_s1 = inlined_call_operand.vmem [shape: f32[1,32], index: 1, kind: input, shape index: {}]   ;;  %s799_s2 = inlined_call_operand.vmem [shape: f32[1,32], index: 2, kind: input, shape index: {}]   ;;  %s800_s3 = inlined_call_operand.vmem [shape: f32[32,128], index: 3, kind: input, shape index: {}]   ;;  %s801_s4 = inlined_call_operand.vmem [shape: f32[1,128], index: 4, kind: input, shape index: {}]   ;;  %s802_s5 = inlined_call_operand.vmem [shape: f32[128,32], index: 5, kind: input, shape index: {}]   ;;  %s803_s6 = inlined_call_operand.vmem [shape: f32[1,32], index: 6, kind: input, shape index: {}]   ;;  %s804_s7 = inlined_call_operand.hbm [shape: f32[16,32], index: 7, kind: output, shape index: {}]  }
   0x1   :  { %14 = vsyncpa [#allocation3 + $0x1], 0  ;;  %s636_s24 = smov 0   ;;  %s638_s25 = smov 0  }
   0x2   :  { %s640_s26 = smov 0   ;;  %s642_s27 = smov 0  }
   0x3 LB: > { %s657_s28 = sadd.s32 4294967295, %s593_s27   ;;  %s470_s29 = sadd.s32 4294967294, %s593_s27   ;;  %s593_s27 = sphi %s642_s27, %s810_s27   ;;  %s589_s26 = sphi %s640_s26, %s809_s26   ;;  %s585_s25 = sphi %s638_s25, %s808_s25   ;;  %s581_s24 = sphi %s636_s24, %s807_s24  }
   0x4   : > { %s661_s30 = sadd.s32 1, %s593_s27   ;;  %s179_s8 = sadd.s32 1, %s589_s26 }
   0x5   : > { %s176_s9 = ssub.s32 %s593_s27, %s661_s30  ;;  %p189_p0 = scmp.ne.s32.totalorder %s589_s26, %s585_s25 }
   0x6   : > { %p177_p1 = scmp.eq.s32.totalorder %s176_s9, 0  ;;  %p190_p2 = scmp.eq.s32.totalorder %s657_s28, 1 }
   0x7   : > { %p195_p3 = scmp.ne.s32.totalorder %s585_s25, %s581_s24  ;;  %p196_p4 = scmp.eq.s32.totalorder %s470_s29, 1 }
   0x8   : > { %s672_s10 = scalar_select %p177_p1, %s589_s26, %s179_s8  }
   0x9   : > { %p674_p5 = por %p190_p2, %p189_p0  ;;  %p678_p6 = por %p196_p4, %p195_p3 }
   0xa   : > { %p473_p7 = scmp.ge.s32.totalorder %s593_s27, 1  ;;  %p239_p8 = scmp.lt.s32.totalorder %s593_s27, 3 }
   0xc   : > { %p240_p9 = pnand %p473_p7, %p239_p8 }
   0xd   : > { %p270_p10 = scmp.lt.s32.totalorder (!%p240_p9), %s657_s28, 1  ;;  %s267_s22 = sand.u32 (!%p240_p9), 1, %s585_s25  }
   0xe   : > { %243 = sbr.rel (%p240_p9) target bundleno = 570 (0x23a), region = 48  ;;  %s474_s23 = sshll.u32 (!%p240_p9), %s267_s22, 3 }
   0xf   : > { %s478_s29 = sshll.u32 (!%p240_p9), %s657_s28, 3  ;;  %s269_s16 = scalar_lea.vmem (!%p240_p9), [#allocation2], %s474_s23 }
  0x10   : > { %s396_s19 = scalar_lea.sflag (!%p240_p9), [#allocation3], %s267_s22  ;;  %s551_s23 = scalar_lea.hbm (!%p240_p9), %s804_s7, 16 }
  0x13   : > { %s271_s13 = scalar_select %p270_p10, %s657_s28, 1  ;;  %vm275_vm0 = vcmask 261120   ;;  %v595_v2 = vmov 32.0   ;;  %v318_v14 = vld [vmem:[%s800_s3 + $0x18] sm:$0xff]  ;;  %v317_v15 = vld [vmem:[%s800_s3 + $0x10] sm:$0xff]  ;;  %v316_v16 = vld [vmem:[%s800_s3 + $0x8] sm:$0xff] }
  0x14   : > { %525 = vrcp.f32 %v595_v2  ;;  %338 = vmatpush.msra.mxu0 %v318_v14  ;;  %v315_v17 = vld [vmem:[%s800_s3] sm:$0xff]  ;;  %v369_v18 = vld [vmem:[%s802_s5 + $0x78] sm:$0xff]  ;;  %v368_v19 = vld [vmem:[%s802_s5 + $0x70] sm:$0xff] }
  0x15   : > { %s475_s14 = sshll.u32 %s271_s13, 3  ;;  %374 = vmatpush.msra.mxu1 %v369_v18  ;;  %v367_v20 = vld [vmem:[%s802_s5 + $0x68] sm:$0xff]  ;;  %v366_v23 = vld [vmem:[%s802_s5 + $0x60] sm:$0xff]  ;;  %v365_v25 = vld [vmem:[%s802_s5 + $0x58] sm:$0xff]  ;;  %s406_s13 = scalar_lea.hbm %s804_s7, %s478_s29 }
  0x16   : > { %s273_s17 = scalar_lea.vmem %s797_s0, %s475_s14  ;;  %339 = vmatpush.msra.mxu0 %v317_v15  ;;  %v521_v32 = vld [vmem:[%s798_s1] ss:$0 sm:$0xff]  ;;  %v364_v38 = vld [vmem:[%s802_s5 + $0x50] sm:$0xff]  ;;  %v363_v39 = vld [vmem:[%s802_s5 + $0x48] sm:$0xff]  ;;  %s410_s18 = sshll.u32 %s406_s13, 4  ;;  %s411_s18 = int_to_ptr.hbm [resolvable:$true] %s410_s18 }
  0x17   : > { %v274_v0 = vld [vmem:[%s273_s17] sm:$0xff]  ;;  %375 = vmatpush.msra.mxu1 %v368_v19  ;;  %v361_v41 = vld [vmem:[%s802_s5 + $0x38] sm:$0xff]  ;;  %v360_v42 = vld [vmem:[%s802_s5 + $0x30] sm:$0xff]  ;;  %s408_s17 = sshll.u32 %s269_s16, 4  ;;  %s545_s28 = sshra.s32 %s411_s18, 4  ;;  %s409_s17 = int_to_ptr.vmem [resolvable:$true] %s408_s17  ;;  %s546_s28 = int_to_ptr.hbm [resolvable:$true] %s545_s28 }
  0x18   : > { %v276_v1 = vsel %vm275_vm0, %v274_v0, 0.0  ;;  %340 = vmatpush.msra.mxu0 %v316_v16  ;;  %v522_v35 = vld [vmem:[%s799_s2] ss:$0 sm:$0xff]  ;;  %v359_v43 = vld [vmem:[%s802_s5 + $0x28] sm:$0xff]  ;;  %v357_v45 = vld [vmem:[%s802_s5 + $0x18] sm:$0xff]  ;;  %s547_s20 = scalar_lea.hbm %s546_s28, 8  ;;  %p552_p0 = scmp.lt.s32.totalorder %s546_s28, %s804_s7 }
  0x19   : > { %277 = vadd.xlane.f32.xlu0 %v276_v1  ;;  %376 = vmatpush.msra.mxu1 %v367_v20  ;;  %v362_v40 = vld [vmem:[%s802_s5 + $0x40] sm:$0xff]  ;;  %v356_v46 = vld [vmem:[%s802_s5 + $0x10] sm:$0xff]  ;;  %v355_v47 = vld [vmem:[%s802_s5 + $0x8] sm:$0xff]  ;;  %p548_p11 = scmp.ne.s32.totalorder %s546_s28, %s547_s20  ;;  %p553_p1 = scmp.lt.s32.totalorder %s551_s23, %s547_s20 }
  0x1a   : > { %v526_v3 = vpop.eup %525  ;;  %341 = vmatpush.msra.mxu0 %v315_v17  ;;  %v358_v44 = vld [vmem:[%s802_s5 + $0x20] sm:$0xff] }
  0x1b   : > { %v280_v4 = vmul.f32 32.0, %v526_v3  ;;  %vm284_vm1 = vweird.f32 %v526_v3  ;;  %377 = vmatpush.msra.mxu1 %v366_v23  ;;  %v354_v48 = vld [vmem:[%s802_s5] sm:$0xff]  ;;  %p549_p12 = pnand %p548_p11, %p674_p5  ;;  %p554_p2 = por %p553_p1, %p552_p0 }
  0x1c   : > { %v523_v49 = vld [vmem:[%s801_s4] ss:$0 sm:$0xff] }
  0x1d   : > { %v281_v5 = vsub.f32 1.0, %v280_v4  ;;  %378 = vmatpush.msra.mxu1 %v365_v25  ;;  %v524_v60 = vld [vmem:[%s803_s6] ss:$0 sm:$0xff]  ;;  %p550_p13 = pneg %p549_p12 }
  0x1f   : > { %v282_v6 = vmul.f32 %v526_v3, %v281_v5  ;;  %379 = vmatpush.msra.mxu1 %v364_v38  ;;  %p555_p3 = pnand %p554_p2, %p550_p13 }
  0x21   : > { %v283_v7 = vadd.f32 %v526_v3, %v282_v6  ;;  %380 = vmatpush.msra.mxu1 %v363_v39 }
  0x23   : > { %v285_v8 = vsel %vm284_vm1, %v526_v3, %v283_v7  ;;  %381 = vmatpush.msra.mxu1 %v362_v40 }
  0x25   : > { %382 = vmatpush.msra.mxu1 %v361_v41 }
  0x27   : > { %383 = vmatpush.msra.mxu1 %v360_v42 }
  0x29   : > { %384 = vmatpush.msra.mxu1 %v359_v43 }
  0x2b   : > { %385 = vmatpush.msra.mxu1 %v358_v44 }
  0x2d   : > { %386 = vmatpush.msra.mxu1 %v357_v45 }
  0x2f   : > { %387 = vmatpush.msra.mxu1 %v356_v46 }
  0x31   : > { %388 = vmatpush.msra.mxu1 %v355_v47 }
  0x33   : > { %389 = vmatpush.msra.mxu1 %v354_v48 }
  0x8c   : > { %v278_v9 = vpop.xlane.xlu0 %277 }
  0x8d   : > { %v286_v10 = vmul.f32 %v285_v8, %v278_v9 }
  0x8f   : > { %v287_v11 = vsub.f32 %v274_v0, %v286_v10 }
  0x91   : > { %v288_v12 = vmul.f32 %v287_v11, %v287_v11 }
  0x93   : > { %v289_v13 = vsel %vm275_vm0, %v288_v12, 0.0 }
  0x94   : > { %290 = vadd.xlane.f32.xlu0 %v289_v13 }
 0x107   : > { %v291_v21 = vpop.xlane.xlu0 %290 }
 0x108   : > { %v292_v22 = vmul.f32 %v291_v21, %v285_v8 }
 0x10a   : > { %v293_v24 = vadd.f32 1e-05, %v292_v22 }
 0x10c   : > { %527 = vrsqrt.f32 %v293_v24  ;;  %vm300_vm3 = vweird.f32 %v293_v24 }
 0x112   : > { %v528_v26 = vpop.eup %527 }
 0x113   : > { %v295_v27 = vmul.f32 %v528_v26, %v293_v24  ;;  %vm301_vm2 = vweird.f32 %v528_v26 }
 0x114   : > { %vm302_vm4 = vmor %vm300_vm3, %vm301_vm2 }
 0x115   : > { %v296_v28 = vmul.f32 %v528_v26, %v295_v27 }
 0x117   : > { %v297_v29 = vmul.f32 0.5, %v296_v28 }
 0x119   : > { %v298_v30 = vsub.f32 1.5, %v297_v29 }
 0x11b   : > { %v299_v31 = vmul.f32 %v528_v26, %v298_v30 }
 0x11d   : > { %v303_v33 = vsel %vm302_vm4, %v528_v26, %v299_v31 }
 0x11e   : > { %v304_v34 = vmul.f32 %v303_v33, %v287_v11 }
 0x120   : > { %v309_v36 = vmul.f32 %v521_v32, %v304_v34 }
 0x122   : > { %v314_v37 = vadd.f32 %v522_v35, %v309_v36 }
 0x124   : > { %476 = vmatmul.msk.f32.vlgmr.msra.gmra.mxu0 %vm275_vm0, %v314_v37 }
 0x1a1   : > { %v343_v50 = vpop.f32.mrf.mxu0 }
 0x1a2   : > { %v344_v51 = vadd.f32 %v523_v49, %v343_v50 }
 0x1a4   : > { %v347_v52 = vmul.f32 0.044715, %v344_v51  ;;  %v346_v57 = vmul.f32 0.5, %v344_v51 }
 0x1a6   : > { %v348_v53 = vmul.f32 %v347_v52, %v344_v51 }
 0x1a8   : > { %v349_v54 = vadd.f32 1.0, %v348_v53 }
 0x1aa   : > { %v350_v55 = vmul.f32 %v349_v54, %v344_v51 }
 0x1ac   : > { %529 = vtanh.f32 %v350_v55 }
 0x1b2   : > { %v530_v56 = vpop.eup %529 }
 0x1b3   : > { %v352_v58 = vadd.f32 1.0, %v530_v56 }
 0x1b5   : > { %v353_v59 = vmul.f32 %v352_v58, %v346_v57 }
 0x1b7   : > { %390 = vmatmul.f32.vlgmr.msra.gmra.mxu1 %v353_v59 }
 0x234   : > { %v391_v61 = vpop.f32.mrf.mxu1 }
 0x235   : > { %v392_v62 = vadd.f32 %v524_v60, %v391_v61 }
 0x237   : > { %394 = vst.msk [vmem:[%s269_s16] sm:$0xff] %vm275_vm0, %v392_v62 }
 0x238   : > { %558 = shalt.err (!%p555_p3)
}
 0x239   : > { %481 = dma.vmem_to_hbm [thread:$0]  (%p674_p5), %s409_s17, 128, %s411_s18, %s396_s19  }
 0x23a PF: > { %p487_p4 = scmp.ge.s32.totalorder %s593_s27, 2  ;;  %s422_s22 = sand.u32 1, %s581_s24  }
 0x23b   : > { %s423_s13 = scalar_lea.sflag [#allocation3], %s422_s22 }
 0x23c   : > { %p484_p7 = pnand %p487_p4, %p678_p6 }
 0x23e   : > { %p485_p8 = pneg %p484_p7 }
 0x240   : > { %576 = dma.done.wait (%p485_p8), %s423_s13, 128  }
 0x241   : > { %578 = vsyncadd (%p485_p8), %s423_s13, 4294967168  ;;  %p17_p9 = scmp.ge.s32.totalorder %s661_s30, 4   ;;  %s807_s24 = smov %s585_s25 }
 0x242   : > { %s808_s25 = smov %s589_s26  ;;  %s809_s26 = smov %s672_s10 }
 0x243   : > { %s810_s27 = smov %s661_s30  ;;  %19 = sbr.rel (!%p17_p9) target bundleno = 3 (0x3), region = 83 }
 0x248   :  { %429 = vsyncpa [#allocation3], 1 }
 0x249   :  { %431 = vsyncpa [#allocation3 + $0x1], 1 }

</bundles_post_ra>
